<compile_context>
chip_gen: v7x
topology: tpu7x:2x2x1
jax: 0.10.0
libtpu: 0.0.40
codegen_flags: <defaults>
</compile_context>

<pallas_src>
import functools

import jax
import jax.numpy as jnp
from jax.experimental import pallas as pl
from jax.experimental.pallas import tpu as pltpu


def _network_s2_kernel(x_ref, y_ref, w1_ref, b1_ref, w2_ref, b2_ref,
                       out_ref, sse_ref, *, n_rows, block_n, needs_mask,
                       lane_dense):
    pid = pl.program_id(0)

    if lane_dense:
        # d_out == 1: transposed, lane-dense formulation.
        #   h_T[j, i] = sum_k w1[j, k] * x[i, k]              (H, bn)   MXU
        #   out[0, i] = sum_j relu(h_T + b1)[j, i] * w2[j]    (1, bn)   VPU/XLU
        h_t = jax.lax.dot_general(
            w1_ref[...], x_ref[...],
            dimension_numbers=(((1,), (1,)), ((), ())),
            preferred_element_type=jnp.float32)
        h_relu = jnp.maximum(h_t + b1_ref[...], 0.0)                  # (H, bn)
        out = (jnp.sum(h_relu * w2_ref[...], axis=0, keepdims=True)
               + b2_ref[...])                                         # (1, bn)
        diff = out - y_ref[...]
        if needs_mask:
            col = pid * block_n + jax.lax.broadcasted_iota(
                jnp.int32, (1, block_n), 1)
            diff = jnp.where(col < n_rows, diff, 0.0)
    else:
        # General d_out: row-major blocks, both layers on the MXU.
        h = jax.lax.dot_general(
            x_ref[...], w1_ref[...],
            dimension_numbers=(((1,), (1,)), ((), ())),
            preferred_element_type=jnp.float32)
        h_relu = jnp.maximum(h + b1_ref[...], 0.0)                    # (bn, H)
        out = jax.lax.dot_general(
            h_relu, w2_ref[...],
            dimension_numbers=(((1,), (1,)), ((), ())),
            preferred_element_type=jnp.float32) + b2_ref[...]         # (bn, dO)
        diff = out - y_ref[...]
        if needs_mask:
            row = pid * block_n + jax.lax.broadcasted_iota(
                jnp.int32, (block_n, 1), 0)
            diff = jnp.where(row < n_rows, diff, 0.0)

    out_ref[...] = out.astype(out_ref.dtype)

    # Per-block partial sum-of-squared-errors, written to this block's own
    # output tile (no cross-step SMEM accumulation) so the grid axis can run
    # "parallel" across TensorCores; the wrapper sums the partials.
    block_sse = jnp.sum(diff * diff)
    sse_ref[...] = jnp.full(sse_ref.shape, block_sse, jnp.float32)


def network_s2_forward(x, y, w1, b1, w2, b2, reg_strength=0.0, *,
                       loss_function="RMSE",
                       max_block_rows=32768,
                       vmem_block_budget_bytes=16 * 1024 * 1024,
                       bf16_matmul=None):
    """Forward pass of Network_s2.

    x:  (N, D_in),  y: (N, D_out)
    w1: (H, D_in),  b1: (H,)      -- torch.nn.Linear(inputDimension, hiddenNode)
    w2: (D_out, H), b2: (D_out,)  -- torch.nn.Linear(hiddenNode, outputDimension)
    Returns (output, loss) like the PyTorch module.
    """
    x = jnp.asarray(x, jnp.float32)
    w1 = jnp.asarray(w1, jnp.float32)
    b1 = jnp.asarray(b1, jnp.float32)
    w2 = jnp.asarray(w2, jnp.float32)
    b2 = jnp.asarray(b2, jnp.float32)

    n, d_in = x.shape
    hidden = w1.shape[0]
    d_out = w2.shape[0]
    y = jnp.asarray(y, jnp.float32).reshape(n, d_out)

    lane_dense = (d_out == 1)

    # bf16 matmul inputs only when feature dims are large enough that halving
    # the dominant x HBM stream matters and numerics tolerate it (f32 accum).
    if bf16_matmul is None:
        bf16_matmul = (d_in >= 256 and hidden >= 128)
    in_dtype = jnp.bfloat16 if bf16_matmul else jnp.float32
    x_item = jnp.dtype(in_dtype).itemsize
    x_in = x.astype(in_dtype)
    w1_in = w1.astype(in_dtype)

    # ---- Row-block sizing from a per-step VMEM budget (per-generation knob;
    #      v7x has 64 MiB physical / 32 MiB scoped default -> keep the default
    #      budget conservative and raise it for v5e/v6e if desired).
    d_eff = 1 if lane_dense else d_out
    per_row_bytes = (2 * d_in * x_item        # double-buffered x block
                     + 3 * hidden * 4         # h / relu / product intermediates
                     + 8 * d_eff * 4)         # y + out blocks (x2 buf) + temps
    weights_bytes = 2 * (hidden * d_in * x_item + hidden * 4
                         + d_out * hidden * 4 + d_out * 4)
    budget = max(vmem_block_budget_bytes - weights_bytes, 1 << 20)
    cap_rows = max(budget // per_row_bytes, 128)
    if n <= min(cap_rows, max_block_rows):
        block_n = n                     # single exact block, no mask needed
    else:
        block_n = min(cap_rows, max_block_rows)
        block_n = max((block_n // 128) * 128, 128)
    grid_n = pl.cdiv(n, block_n)
    needs_mask = (n % block_n) != 0     # ragged last block -> in-kernel mask

    # ---- BlockSpecs.
    w1_spec = pl.BlockSpec((hidden, d_in), lambda i: (0, 0))
    if lane_dense:
        y_in = y.reshape(1, n)
        b1_in = b1.reshape(hidden, 1)
        w2_in = w2.reshape(hidden, 1)
        b2_in = b2.reshape(1, 1)
        out_struct = jax.ShapeDtypeStruct((1, n), jnp.float32)
        x_spec = pl.BlockSpec((block_n, d_in), lambda i: (i, 0))
        y_spec = pl.BlockSpec((1, block_n), lambda i: (0, i))
        out_spec = pl.BlockSpec((1, block_n), lambda i: (0, i))
        b1_spec = pl.BlockSpec((hidden, 1), lambda i: (0, 0))
        w2_spec = pl.BlockSpec((hidden, 1), lambda i: (0, 0))
        b2_spec = pl.BlockSpec((1, 1), lambda i: (0, 0))
    else:
        y_in = y
        b1_in = b1.reshape(1, hidden)
        w2_in = w2
        b2_in = b2.reshape(1, d_out)
        out_struct = jax.ShapeDtypeStruct((n, d_out), jnp.float32)
        x_spec = pl.BlockSpec((block_n, d_in), lambda i: (i, 0))
        y_spec = pl.BlockSpec((block_n, d_out), lambda i: (i, 0))
        out_spec = pl.BlockSpec((block_n, d_out), lambda i: (i, 0))
        b1_spec = pl.BlockSpec((1, hidden), lambda i: (0, 0))
        w2_spec = pl.BlockSpec((d_out, hidden), lambda i: (0, 0))
        b2_spec = pl.BlockSpec((1, d_out), lambda i: (0, 0))

    sse_struct = jax.ShapeDtypeStruct((grid_n, 1, 128), jnp.float32)
    sse_spec = pl.BlockSpec((1, 1, 128), lambda i: (i, 0, 0))

    kernel = functools.partial(
        _network_s2_kernel, n_rows=n, block_n=block_n,
        needs_mask=needs_mask, lane_dense=lane_dense)

    cost = pl.CostEstimate(
        flops=2 * n * hidden * (d_in + d_out) + 2 * n * hidden,
        transcendentals=0,
        bytes_accessed=(n * d_in * x_item + 4 * n * 2 * d_out
                        + hidden * d_in * x_item
                        + 4 * (hidden + d_out * hidden + d_out)
                        + 4 * grid_n * 128))

    vmem_limit = int(min(64 * 1024 * 1024,
                         max(32 * 1024 * 1024, 2 * vmem_block_budget_bytes)))

    out, sse_part = pl.pallas_call(
        kernel,
        out_shape=(out_struct, sse_struct),
        grid=(grid_n,),
        in_specs=[x_spec, y_spec, w1_spec, b1_spec, w2_spec, b2_spec],
        out_specs=(out_spec, sse_spec),
        compiler_params=pltpu.CompilerParams(
            dimension_semantics=("parallel",),   # independent row blocks
            vmem_limit_bytes=vmem_limit),
        cost_estimate=cost,
    )(x_in, y_in, w1_in, b1_in, w2_in, b2_in)

    # ---- Loss epilogue in the wrapper (cheap XLA work; keeps the grid parallel).
    sse = jnp.sum(sse_part[:, 0, 0])
    mse = sse / jnp.float32(n * d_out)

    # torch: reg_strength / (D_in + 1 + D_in * (H + 1)) * param_val
    reg_denom = d_in + 1 + d_in * (hidden + 1)
    if isinstance(reg_strength, (int, float)) and reg_strength == 0:
        reg_term = jnp.float32(0.0)
    else:
        param_val = (jnp.sum(b2 * b2) + jnp.sum(w2 * w2)
                     + jnp.sum(b1 * b1) + jnp.sum(w1 * w1))
        reg_term = (jnp.asarray(reg_strength, jnp.float32)
                    / jnp.float32(reg_denom)) * param_val

    if loss_function == "RMSE":
        loss = jnp.sqrt(mse) + reg_term
    elif loss_function == "MSE":
        loss = mse + reg_term
    else:
        # TODO(synk): 'CROSSENTROPYLOSS' branch of the original module is not implemented.
        raise ValueError(f"unsupported loss_function: {loss_function}")

    if lane_dense:
        out = out.reshape(n, d_out)
    return out, loss


if __name__ == "__main__":
    def reference(x, y, w1, b1, w2, b2, reg_strength, loss_function="RMSE"):
        h = jnp.maximum(x @ w1.T + b1, 0.0)
        out = h @ w2.T + b2
        mse = jnp.mean((out - y) ** 2)
        param_val = (jnp.sum(b2 ** 2) + jnp.sum(w2 ** 2)
                     + jnp.sum(b1 ** 2) + jnp.sum(w1 ** 2))
        denom = x.shape[1] + 1 + x.shape[1] * (w1.shape[0] + 1)
        reg = reg_strength / denom * param_val
        loss = jnp.sqrt(mse) + reg if loss_function == "RMSE" else mse + reg
        return out, loss

    def check(out, loss, out_ref, loss_ref, tag):
        assert jnp.allclose(out, out_ref, atol=1e-4, rtol=1e-4), f"output mismatch ({tag})"
        assert jnp.allclose(loss, loss_ref, atol=1e-4, rtol=1e-4), f"loss mismatch ({tag})"

    key = jax.random.PRNGKey(0)
    D_IN, HIDDEN = 16, 32
    bound1 = 1.0 / (D_IN ** 0.5)
    bound2 = 1.0 / (HIDDEN ** 0.5)

    def make_params(k, d_out):
        kw1, kb1, kw2, kb2 = jax.random.split(k, 4)
        w1 = jax.random.uniform(kw1, (HIDDEN, D_IN), jnp.float32, -bound1, bound1)
        b1 = jax.random.uniform(kb1, (HIDDEN,), jnp.float32, -bound1, bound1)
        w2 = jax.random.uniform(kw2, (d_out, HIDDEN), jnp.float32, -bound2, bound2)
        b2 = jax.random.uniform(kb2, (d_out,), jnp.float32, -bound2, bound2)
        return w1, b1, w2, b2

    kp, kd = jax.random.split(key)
    w1, b1, w2, b2 = make_params(kp, 1)

    # Case 1: small batch, d_out=1 (lane-dense path, single exact block), reg != 0.
    kx, ky = jax.random.split(kd)
    x = jax.random.normal(kx, (8, D_IN), jnp.float32)
    y = jax.random.normal(ky, (8, 1), jnp.float32)
    out, loss = network_s2_forward(x, y, w1, b1, w2, b2, 0.01)
    jax.block_until_ready((out, loss))
    check(out, loss, *reference(x, y, w1, b1, w2, b2, 0.01), tag="small d_out=1")

    # Case 2: multi-block + ragged last block (mask, parallel grid), reg = 0.
    kx2, ky2 = jax.random.split(kx)
    x2 = jax.random.normal(kx2, (300, D_IN), jnp.float32)
    y2 = jax.random.normal(ky2, (300, 1), jnp.float32)
    out2, loss2 = network_s2_forward(x2, y2, w1, b1, w2, b2, 0.0,
                                     max_block_rows=128)
    jax.block_until_ready((out2, loss2))
    check(out2, loss2, *reference(x2, y2, w1, b1, w2, b2, 0.0), tag="ragged d_out=1")

    # Case 3: d_out > 1 (general MXU path), single block, RMSE with reg.
    w1c, b1c, w2c, b2c = make_params(kd, 3)
    kx3, ky3 = jax.random.split(ky)
    x3 = jax.random.normal(kx3, (20, D_IN), jnp.float32)
    y3 = jax.random.normal(ky3, (20, 3), jnp.float32)
    out3, loss3 = network_s2_forward(x3, y3, w1c, b1c, w2c, b2c, 0.01)
    jax.block_until_ready((out3, loss3))
    check(out3, loss3, *reference(x3, y3, w1c, b1c, w2c, b2c, 0.01), tag="d_out=3")

    # Case 4: d_out > 1, multi-block ragged, MSE loss variant.
    kx4, ky4 = jax.random.split(kx3)
    x4 = jax.random.normal(kx4, (300, D_IN), jnp.float32)
    y4 = jax.random.normal(ky4, (300, 3), jnp.float32)
    out4, loss4 = network_s2_forward(x4, y4, w1c, b1c, w2c, b2c, 0.0,
                                     loss_function="MSE", max_block_rows=128)
    jax.block_until_ready((out4, loss4))
    check(out4, loss4, *reference(x4, y4, w1c, b1c, w2c, b2c, 0.0, "MSE"),
          tag="d_out=3 MSE")

    print("KERNEL_OK")
</pallas_src>

<mosaic_0001>
module attributes {stable_mosaic.version = 11 : i64} {
  func.func @_network_s2_kernel(%arg0: i32, %arg1: memref<8x16xf32, #tpu.memory_space<vmem>>, %arg2: memref<1x8xf32, #tpu.memory_space<vmem>>, %arg3: memref<32x16xf32, #tpu.memory_space<vmem>>, %arg4: memref<32x1xf32, #tpu.memory_space<vmem>>, %arg5: memref<32x1xf32, #tpu.memory_space<vmem>>, %arg6: memref<1x1xf32, #tpu.memory_space<vmem>>, %arg7: memref<1x8xf32, #tpu.memory_space<vmem>>, %arg8: memref<1x1x128xf32, #tpu.memory_space<vmem>>) attributes {dimension_semantics = [#tpu.dimension_semantics<parallel>], iteration_bounds = array<i64: 1>, scalar_prefetch = 0 : i64, scratch_operands = 0 : i64, tpu.core_type = #tpu.core_type<tc>, window_params = [{transform_indices = @transform_0, window_bounds = array<i64: 8, 16>}, {transform_indices = @transform_1, window_bounds = array<i64: 1, 8>}, {pipeline_mode = #tpu.pipeline_mode<synchronous>, transform_indices = @transform_2, window_bounds = array<i64: 32, 16>}, {pipeline_mode = #tpu.pipeline_mode<synchronous>, transform_indices = @transform_3, window_bounds = array<i64: 32, 1>}, {pipeline_mode = #tpu.pipeline_mode<synchronous>, transform_indices = @transform_4, window_bounds = array<i64: 32, 1>}, {pipeline_mode = #tpu.pipeline_mode<synchronous>, transform_indices = @transform_5, window_bounds = array<i64: 1, 1>}, {transform_indices = @transform_6, window_bounds = array<i64: 1, 8>}, {transform_indices = @transform_7, window_bounds = array<i64: 1, 1, 128>}]} {
    %c0 = arith.constant 0 : index
    %c0_0 = arith.constant 0 : index
    %0 = vector.load %arg3[%c0, %c0_0] : memref<32x16xf32, #tpu.memory_space<vmem>>, vector<32x16xf32>
    %c0_1 = arith.constant 0 : index
    %c0_2 = arith.constant 0 : index
    %1 = vector.load %arg1[%c0_1, %c0_2] : memref<8x16xf32, #tpu.memory_space<vmem>>, vector<8x16xf32>
    %cst = arith.constant dense<0.000000e+00> : vector<32x8xf32>
    %2 = tpu.matmul %0, %1, %cst {dimension_numbers = #tpu.dot_dimension_numbers<[1], [1], [0], [0], [0, 0, 1, 0], [], []>} : vector<32x16xf32>, vector<8x16xf32>, vector<32x8xf32> -> vector<32x8xf32>
    %c0_3 = arith.constant 0 : index
    %c0_4 = arith.constant 0 : index
    %3 = vector.load %arg4[%c0_3, %c0_4] : memref<32x1xf32, #tpu.memory_space<vmem>>, vector<32x1xf32>
    %4 = vector.broadcast %3 : vector<32x1xf32> to vector<32x8xf32>
    %5 = arith.addf %2, %4 : vector<32x8xf32>
    %cst_5 = arith.constant 0.000000e+00 : f32
    %6 = vector.broadcast %cst_5 : f32 to vector<32x8xf32>
    %7 = arith.maximumf %5, %6 : vector<32x8xf32>
    %c0_6 = arith.constant 0 : index
    %c0_7 = arith.constant 0 : index
    %8 = vector.load %arg5[%c0_6, %c0_7] : memref<32x1xf32, #tpu.memory_space<vmem>>, vector<32x1xf32>
    %9 = vector.broadcast %8 : vector<32x1xf32> to vector<32x8xf32>
    %10 = arith.mulf %7, %9 : vector<32x8xf32>
    %cst_8 = arith.constant dense<0.000000e+00> : vector<8xf32>
    %11 = vector.multi_reduction <add>, %10, %cst_8 [0] : vector<32x8xf32> to vector<8xf32>
    %12 = vector.shape_cast %11 : vector<8xf32> to vector<1x8xf32>
    %c0_9 = arith.constant 0 : index
    %c0_10 = arith.constant 0 : index
    %13 = vector.load %arg6[%c0_9, %c0_10] : memref<1x1xf32, #tpu.memory_space<vmem>>, vector<1x1xf32>
    %14 = vector.broadcast %13 : vector<1x1xf32> to vector<1x8xf32>
    %15 = arith.addf %12, %14 : vector<1x8xf32>
    %c0_11 = arith.constant 0 : index
    %c0_12 = arith.constant 0 : index
    %16 = vector.load %arg2[%c0_11, %c0_12] : memref<1x8xf32, #tpu.memory_space<vmem>>, vector<1x8xf32>
    %17 = arith.subf %15, %16 : vector<1x8xf32>
    %c0_13 = arith.constant 0 : index
    %c0_14 = arith.constant 0 : index
    %18 = vector.load %arg7[%c0_13, %c0_14] : memref<1x8xf32, #tpu.memory_space<vmem>>, vector<1x8xf32>
    tpu.vector_store %arg7[%c0_13, %c0_14], %15 {strides = array<i32>} : memref<1x8xf32, #tpu.memory_space<vmem>>, vector<1x8xf32>,
    %19 = arith.mulf %17, %17 : vector<1x8xf32>
    %20 = vector.shape_cast %19 : vector<1x8xf32> to vector<1x1x8xf32>
    %cst_15 = arith.constant dense<0.000000e+00> : vector<1xf32>
    %21 = vector.multi_reduction <add>, %20, %cst_15 [1, 2] : vector<1x1x8xf32> to vector<1xf32>
    %22 = vector.shape_cast %21 : vector<1xf32> to vector<1x1x1xf32>
    %23 = vector.extract %22[0, 0, 0] : f32 from vector<1x1x1xf32>
    %24 = vector.broadcast %23 : f32 to vector<1x1x128xf32>
    %c0_16 = arith.constant 0 : index
    %c0_17 = arith.constant 0 : index
    %c0_18 = arith.constant 0 : index
    %25 = vector.load %arg8[%c0_16, %c0_17, %c0_18] : memref<1x1x128xf32, #tpu.memory_space<vmem>>, vector<1x1x128xf32>
    tpu.vector_store %arg8[%c0_16, %c0_17, %c0_18], %24 {strides = array<i32>} : memref<1x1x128xf32, #tpu.memory_space<vmem>>, vector<1x1x128xf32>,
    return
  }
  func.func @transform_0(%arg0: i32) -> (i32, i32) {
    %c0_i32 = arith.constant 0 : i32
    %c0_i32_0 = arith.constant 0 : i32
    return %arg0, %c0_i32 : i32, i32
  }
  func.func @transform_1(%arg0: i32) -> (i32, i32) {
    %c0_i32 = arith.constant 0 : i32
    %c0_i32_0 = arith.constant 0 : i32
    return %c0_i32, %arg0 : i32, i32
  }
  func.func @transform_2(%arg0: i32) -> (i32, i32) {
    %c0_i32 = arith.constant 0 : i32
    %c0_i32_0 = arith.constant 0 : i32
    %c0_i32_1 = arith.constant 0 : i32
    return %c0_i32, %c0_i32_0 : i32, i32
  }
  func.func @transform_3(%arg0: i32) -> (i32, i32) {
    %c0_i32 = arith.constant 0 : i32
    %c0_i32_0 = arith.constant 0 : i32
    %c0_i32_1 = arith.constant 0 : i32
    return %c0_i32, %c0_i32_0 : i32, i32
  }
  func.func @transform_4(%arg0: i32) -> (i32, i32) {
    %c0_i32 = arith.constant 0 : i32
    %c0_i32_0 = arith.constant 0 : i32
    %c0_i32_1 = arith.constant 0 : i32
    return %c0_i32, %c0_i32_0 : i32, i32
  }
  func.func @transform_5(%arg0: i32) -> (i32, i32) {
    %c0_i32 = arith.constant 0 : i32
    %c0_i32_0 = arith.constant 0 : i32
    %c0_i32_1 = arith.constant 0 : i32
    return %c0_i32, %c0_i32_0 : i32, i32
  }
  func.func @transform_6(%arg0: i32) -> (i32, i32) {
    %c0_i32 = arith.constant 0 : i32
    %c0_i32_0 = arith.constant 0 : i32
    return %c0_i32, %arg0 : i32, i32
  }
  func.func @transform_7(%arg0: i32) -> (i32, i32, i32) {
    %c0_i32 = arith.constant 0 : i32
    %c0_i32_0 = arith.constant 0 : i32
    %c0_i32_1 = arith.constant 0 : i32
    return %arg0, %c0_i32, %c0_i32_0 : i32, i32, i32
  }
}

</mosaic_0001>

<bundles_post_ra>
// kernel: tpu_custom_call.1
= control target key start
LH: loop header
LB: loop body
LE: loop exit
PB: predicated region body
PF: predicated region fallthrough
CT: control target
= control target key end

     0   :  { %s456_s0 = inlined_call_operand.vmem [shape: f32[8,16], index: 0, kind: input, shape index: {}]   ;;  %s457_s1 = inlined_call_operand.vmem [shape: f32[1,8], index: 1, kind: input, shape index: {}]   ;;  %s458_s2 = inlined_call_operand.vmem [shape: f32[32,16], index: 2, kind: input, shape index: {}]   ;;  %s459_s3 = inlined_call_operand.vmem [shape: f32[32,1], index: 3, kind: input, shape index: {}]   ;;  %s460_s4 = inlined_call_operand.vmem [shape: f32[32,1], index: 4, kind: input, shape index: {}]   ;;  %s461_s5 = inlined_call_operand.<no memory space> [shape: f32[1,1], index: 5, kind: input, shape index: {}]   ;;  %s462_s6 = inlined_call_operand.hbm [shape: f32[1,8], index: 6, kind: output, shape index: {0}]   ;;  %s463_s7 = inlined_call_operand.hbm [shape: f32[1,1,128], index: 7, kind: output, shape index: {1}]  }
   0x1   :  { %v13_v0 = vstv %s461_s5 }
   0x2   :  { %14 = vst [vmem:[#allocation2] sm:$0x1] %v13_v0 }
   0x3   :  { %15 = vsyncpa [#allocation4], 0  ;;  %v33_v1 = vld [vmem:[%s456_s0] sm:$0xff]  ;;  %vm58_vm0 = vcmask 130048   ;;  %v31_v3 = vld [vmem:[%s458_s2 + $0x10] sm:$0xff]  ;;  %v336_v8 = vmov 0  }
   0x4   :  { %v29_v2 = vld [vmem:[%s458_s2] sm:$0xff]  ;;  %271 = vmatprep.subr.msk.mxu0 %vm58_vm0, %v33_v1  ;;  %279 = vmatprep.subr.msk.mxu1 %vm58_vm0, %v33_v1  ;;  %v30_v4 = vld [vmem:[%s458_s2 + $0x8] sm:$0xff]  ;;  %v32_v5 = vld [vmem:[%s458_s2 + $0x18] sm:$0xff] }
   0x5   :  { %272 = vmatpush3.xpose.msk.msra.mxu0 %vm58_vm0, %v33_v1  ;;  %280 = vmatpush3.xpose.msk.msra.mxu1 %vm58_vm0, %v33_v1  ;;  %v34_v6 = vld [vmem:[%s459_s3] sm:$0xff]  ;;  %v36_v7 = vld [vmem:[%s459_s3 + $0x10] sm:$0xff] }
   0x6   :  { %273 = vmatprep.mubr.msk.f32.mxu0 %vm58_vm0, %v29_v2  ;;  %276 = vmatprep.mubr.msk.f32.mxu1 %vm58_vm0, %v31_v3 }
   0x7   :  { %286 = vset.pattern.permute.xlu0 %v336_v8  ;;  %287 = vset.pattern.permute.xlu1 %v336_v8 }
   0x8   :  { %16 = vsyncpa [#allocation6], 0  ;;  %274 = vmatmul.mubr.msk.f32.vlgmr.msra.gmra.mrb[0].mxu0 %vm58_vm0, %v30_v4  ;;  %277 = vmatmul.mubr.msk.f32.vlgmr.msra.gmra.mrb[0].mxu1 %vm58_vm0, %v32_v5  ;;  %v35_v9 = vld [vmem:[%s459_s3 + $0x8] sm:$0xff]  ;;  %v37_v10 = vld [vmem:[%s459_s3 + $0x18] sm:$0xff]  ;;  %vm191_vm1 = vcmask 64512   ;;  %v211_v46 = vlaneseq  ;;  %vm218_vm2 = vcmask 57344  }
   0x9   :  { %40 = vperm.xlu0 %286, %v34_v6   ;;  %50 = vperm.xlu1 %287, %v36_v7   ;;  %v163_v11 = vld [vmem:[%s460_s4] sm:$0xff]  ;;  %v164_v12 = vld [vmem:[%s460_s4 + $0x8] sm:$0xff]  ;;  %v165_v13 = vld [vmem:[%s460_s4 + $0x10] sm:$0xff]  ;;  %s337_s26 = smov [#allocation3]  }
   0xa   :  { %v166_v14 = vld [vmem:[%s460_s4 + $0x18] sm:$0xff]  ;;  %v205_v15 = vld [vmem:[#allocation2] sm:$0x1]  ;;  %v212_v49 = vshrl.u32 %v211_v46, 7  ;;  %s239_s27 = sshll.u32 %s337_s26, 4  ;;  %s240_s27 = int_to_ptr.vmem [resolvable:$true] %s239_s27 }
   0xb   :  { %v216_v58 = vld [vmem:[%s457_s1] sm:$0x1]  ;;  %s288_s28 = scalar_lea.vmem %s240_s27, 16  ;;  %s292_s29 = scalar_lea.vmem %s240_s27, 32 }
   0xc   :  { %v213_v52 = vsub.s32 0, %v212_v49  ;;  %p289_p0 = scmp.ne.s32.totalorder %s240_s27, %s288_s28  ;;  %p293_p1 = scmp.lt.s32.totalorder %s240_s27, %s240_s27 }
   0xd   :  { %45 = vperm.xlu0 %286, %v35_v9   ;;  %55 = vperm.xlu1 %287, %v37_v10   ;;  %p294_p2 = scmp.lt.s32.totalorder %s292_s29, %s288_s28 }
   0xf   :  { %p295_p3 = por %p294_p2, %p293_p1 }
  0x11   :  { %169 = vperm.xlu0 %286, %v163_v11   ;;  %174 = vperm.xlu1 %287, %v164_v12   ;;  %p296_p4 = pnand %p295_p3, %p289_p0 }
  0x15   :  { %179 = vperm.xlu0 %286, %v165_v13   ;;  %184 = vperm.xlu1 %287, %v166_v14  }
  0x19   :  { %208 = vperm.xlu0 %286, %v205_v15  }
  0x88   :  { %v41_v16 = vpop.permute.xlu0 %40  ;;  %v51_v17 = vpop.permute.xlu1 %50 }
  0x8c   :  { %v46_v18 = vpop.permute.xlu0 %45  ;;  %v56_v19 = vpop.permute.xlu1 %55 }
  0x90   :  { %v170_v20 = vpop.permute.xlu0 %169  ;;  %v175_v21 = vpop.permute.xlu1 %174 }
  0x94   :  { %v180_v34 = vpop.permute.xlu0 %179  ;;  %v185_v38 = vpop.permute.xlu1 %184 }
  0x98   :  { %v209_v54 = vpop.permute.xlu0 %208 }
  0x99   :  { %v214_v56 = vrot.slane %v209_v54, %v213_v52 }
  0xdb   :  { %v275_v22 = vpop.f32.mrb[0].mxu0  ;;  %v278_v23 = vpop.f32.mrb[0].mxu1 }
  0xdc   :  { %v146_v24 = vadd.f32 %v275_v22, %v46_v18  ;;  %v156_v25 = vadd.f32 %v278_v23, %v56_v19  ;;  %v140_v26 = vpop.f32.mrb[1].mxu0  ;;  %v150_v27 = vpop.f32.mrb[1].mxu1 }
  0xdd   :  { %v141_v28 = vadd.f32 %v140_v26, %v41_v16  ;;  %v151_v29 = vadd.f32 %v150_v27, %v51_v17 }
  0xde   :  { %v160_v30 = vmax.f32 %v146_v24, 0.0  ;;  %v162_v31 = vmax.f32 %v156_v25, 0.0 }
  0xdf   :  { %v159_v32 = vmax.f32 %v141_v28, 0.0  ;;  %v161_v33 = vmax.f32 %v151_v29, 0.0 }
  0xe0   :  { %v188_v35 = vmul.f32 %v175_v21, %v160_v30  ;;  %v190_v40 = vmul.f32 %v185_v38, %v162_v31 }
  0xe1   :  { %v187_v36 = vmul.f32 %v170_v20, %v159_v32  ;;  %v189_v37 = vmul.f32 %v180_v34, %v161_v33 }
  0xe2   :  { %v193_v39 = vsel %vm191_vm1, %v188_v35, 0.0  ;;  %v197_v45 = vsel %vm191_vm1, %v190_v40, 0.0 }
  0xe3   :  { %v192_v41 = vsel %vm191_vm1, %v187_v36, 0.0  ;;  %v195_v43 = vsel %vm191_vm1, %v189_v37, 0.0 }
  0xe4   :  { %v194_v42 = vadd.f32 %v193_v39, %v192_v41 }
  0xe6   :  { %v196_v44 = vadd.f32 %v195_v43, %v194_v42 }
  0xe8   :  { %v198_v47 = vadd.f32 %v197_v45, %v196_v44 }
  0xea   :  { %v199_v48 = vrot.slane %v198_v47, 4 }
  0xec   :  { %v200_v50 = vadd.f32 %v199_v48, %v198_v47 }
  0xee   :  { %v201_v51 = vrot.slane %v200_v50, 2 }
  0xf0   :  { %v202_v53 = vadd.f32 %v201_v51, %v200_v50 }
  0xf2   :  { %v203_v55 = vrot.slane %v202_v53, 1 }
  0xf4   :  { %v204_v57 = vadd.f32 %v203_v55, %v202_v53 }
  0xf6   :  { %v215_v59 = vadd.f32 %v214_v56, %v204_v57 }
  0xf8   :  { %v217_v60 = vsub.f32 %v215_v59, %v216_v58  ;;  %219 = vst.msk [vmem:[#allocation3] sm:$0x1] %vm218_vm2, %v215_v59 }
  0xfa   :  { %v220_v61 = vmul.f32 %v217_v60, %v217_v60 }
  0xfc   :  { %v221_v62 = vsel %vm218_vm2, %v220_v61, 0.0 }
  0xfd   :  { %222 = vadd.xlane.f32.xlu1 %v221_v62 }
  0xfe   :  { %299 = shalt.err (!%p296_p4)
}
  0xff   :  { %s300_s8 = scalar_lea.hbm %s462_s6, 16 }
 0x100   :  { %p301_p5 = scmp.ne.s32.totalorder %s462_s6, %s300_s8  ;;  %p304_p6 = scmp.lt.u32.totalorder %s300_s8, %s462_s6 }
 0x102   :  { %p306_p7 = pnand %p304_p6, %p301_p5 }
 0x104   :  { %309 = shalt.err (!%p306_p7)
}
 0x105   :  { %242 = dma.vmem_to_hbm [thread:$0]  %s240_s27, 16, %s462_s6, [#allocation4]  }
 0x106   :  { %s338_s13 = smov [#allocation5]  }
 0x107   :  { %s249_s14 = sshll.u32 %s338_s13, 4  ;;  %s250_s14 = int_to_ptr.vmem [resolvable:$true] %s249_s14 }
 0x108   :  { %s310_s15 = scalar_lea.vmem %s250_s14, 16  ;;  %s314_s16 = scalar_lea.vmem %s250_s14, 32 }
 0x109   :  { %p311_p8 = scmp.ne.s32.totalorder %s250_s14, %s310_s15  ;;  %p315_p9 = scmp.lt.s32.totalorder %s250_s14, %s250_s14 }
 0x10a   :  { %p316_p10 = scmp.lt.s32.totalorder %s314_s16, %s310_s15 }
 0x10c   :  { %p317_p11 = por %p316_p10, %p315_p9 }
 0x10e   :  { %p318_p12 = pnand %p317_p11, %p311_p8 }
 0x18a   :  { %v223_v63 = vpop.xlane.xlu1 %222 }
 0x18b   :  { %v224_v0 = vrot.slane %v223_v63, 4 }
 0x18d   :  { %v225_v1 = vadd.f32 %v224_v0, %v223_v63 }
 0x18f   :  { %v226_v2 = vrot.slane %v225_v1, 2 }
 0x191   :  { %v227_v3 = vadd.f32 %v226_v2, %v225_v1 }
 0x193   :  { %v228_v4 = vrot.slane %v227_v3, 1 }
 0x195   :  { %v229_v5 = vadd.f32 %v228_v4, %v227_v3 }
 0x197   :  { %281 = vpush %v229_v5 }
 0x1c8   :  { %s282_s2 = spop %281 }
 0x1c9   :  { %v231_v6 = vstv %s282_s2 }
 0x1ca   :  { %232 = vst [vmem:[#allocation5] sm:$0x1] %v231_v6 }
 0x1cb   :  { %321 = shalt.err (!%p318_p12)
}
 0x1cc   :  { %s322_s18 = scalar_lea.hbm %s463_s7, 16 }
 0x1cd   :  { %p323_p13 = scmp.ne.s32.totalorder %s463_s7, %s322_s18  ;;  %p326_p0 = scmp.lt.u32.totalorder %s322_s18, %s463_s7 }
 0x1cf   :  { %p328_p1 = pnand %p326_p0, %p323_p13 }
 0x1d1   :  { %331 = shalt.err (!%p328_p1)
}
 0x1d2   :  { %252 = dma.vmem_to_hbm [thread:$0]  %s250_s14, 16, %s463_s7, [#allocation6]  }
 0x1d3   :  { %332 = dma.done.wait [#allocation4], 16  }
 0x1d4   :  { %333 = vsyncadd [#allocation4], 4294967280 }
 0x1d5   :  { %334 = dma.done.wait [#allocation6], 16  }
 0x1d6   :  { %335 = vsyncadd [#allocation6], 4294967280 }
 0x1d7   :  { %259 = vsyncpa [#allocation4], 1 }
 0x1d8   :  { %260 = vsyncpa [#allocation6], 1 }

</bundles_post_ra>
